<compile_context>
chip_gen: v6e
topology: v6e:2x2x1
jax: 0.10.0
libtpu: 0.0.40
codegen_flags: <defaults>
</compile_context>

<pallas_src>
import jax
import jax.numpy as jnp
from jax import lax
from jax.experimental import pallas as pl
from jax.experimental.pallas import tpu as pltpu


def _yolo_decode_kernel(x_ref, mult_ref, add_ref, o_ref):
    """Decode one (NA_TILE, C5, GG) block of raw predictions."""
    # Cast in-VMEM so bf16 inputs DMA half the bytes (kernel is HBM-bound).
    p = x_ref[...].astype(jnp.float32)          # (NA_TILE, C5, GG)
    s = jax.nn.sigmoid(p)                       # dense whole-tile EUP work
    e = jnp.exp(p)                              # dense; only rows 2,3 are kept

    c5 = p.shape[1]
    row = lax.broadcasted_iota(jnp.int32, (1, c5, 1), 1)
    is_wh = jnp.logical_and(row >= 2, row <= 3)

    # rows 0,1 : sigmoid(p)*stride + grid*stride
    # rows 2,3 : exp(p)*anchor_raw   (== exp(p)*(anchor/stride)*stride)
    # rows 4.. : sigmoid(p)
    val = jnp.where(is_wh, e, s)
    o_ref[...] = val * mult_ref[...] + add_ref[...]


def _pick_na_tile(na, bytes_per_row, target_bytes=2 << 20):
    """Largest divisor of na whose block fits ~target_bytes, keeping >=2 grid
    steps so v7x's two TensorCores can both be used."""
    best = 1
    for t in range(1, na + 1):
        if na % t:
            continue
        if t * bytes_per_row > target_bytes:
            continue
        if na >= 2 and na // t < 2:
            continue
        best = t
    return best


def yolo_layer_forward(x, anchors, num_classes, img_dim=416):
    """Pallas equivalent of YOLOLayer.forward(x, targets=None, img_dim=img_dim)."""
    n, c, g, g2 = x.shape
    assert g == g2
    a = len(anchors)
    c5 = num_classes + 5
    assert c == a * c5, "channel dim must equal num_anchors*(num_classes+5)"
    gg = g * g
    stride = float(img_dim) / float(g)

    # Raw predictions in kernel-friendly layout: (N*A, C5, G*G), lane dim = GG.
    # No dtype cast here: the kernel casts inside VMEM.
    x_r = x.reshape(n * a, c5, gg)

    # Per-(n,a)-row multiplicative factors (stride / raw anchors / 1).
    anchors_arr = jnp.asarray(anchors, dtype=jnp.float32)     # (A, 2) raw
    aw = jnp.tile(anchors_arr[:, 0], n)                       # (N*A,)
    ah = jnp.tile(anchors_arr[:, 1], n)
    mult = jnp.ones((n * a, c5), dtype=jnp.float32)
    mult = mult.at[:, 0].set(stride).at[:, 1].set(stride)
    mult = mult.at[:, 2].set(aw).at[:, 3].set(ah)
    mult = mult[:, :, None]                                   # (N*A, C5, 1)

    # Grid offsets precomputed once on the host (identical for every step).
    pos = jnp.arange(gg, dtype=jnp.int32)
    grid_x = (pos % g).astype(jnp.float32) * stride
    grid_y = (pos // g).astype(jnp.float32) * stride
    add = jnp.zeros((1, c5, gg), dtype=jnp.float32)
    add = add.at[0, 0, :].set(grid_x).at[0, 1, :].set(grid_y)

    # Block sizing: pack as many (n,a) rows per step as fit ~2 MiB, keeping
    # >= 2 grid steps for megacore sharding.  Double-buffered in+out stays
    # far under the scoped VMEM limit on v5e/v6e/v7x.
    bytes_per_row = c5 * gg * 4
    na_tile = _pick_na_tile(n * a, bytes_per_row)
    grid = (n * a) // na_tile

    out = pl.pallas_call(
        _yolo_decode_kernel,
        out_shape=jax.ShapeDtypeStruct((n * a, c5, gg), jnp.float32),
        grid_spec=pltpu.PrefetchScalarGridSpec(
            num_scalar_prefetch=0,
            grid=(grid,),
            in_specs=[
                pl.BlockSpec((na_tile, c5, gg), lambda i: (i, 0, 0)),
                pl.BlockSpec((na_tile, c5, 1), lambda i: (i, 0, 0)),
                pl.BlockSpec((1, c5, gg), lambda i: (0, 0, 0)),  # reused block
            ],
            out_specs=pl.BlockSpec((na_tile, c5, gg), lambda i: (i, 0, 0)),
        ),
        compiler_params=pltpu.CompilerParams(
            dimension_semantics=("parallel",),
        ),
    )(x_r, mult, add)

    # (N*A, C5, GG) -> (N, A*GG, C5): PyTorch output layout
    # cat([pred_boxes*stride, conf, cls], -1).
    # NOTE: this transpose is a full extra HBM pass; consumers that can accept
    # the kernel-native lane-dense (N*A, C5, GG) layout should use `out` directly.
    output = out.transpose(0, 2, 1).reshape(n, a * gg, c5)
    # TODO(synk): training branch (targets != None, build_targets + losses/metrics)
    # has no clean Pallas equivalent here; inference returns loss placeholder 0.
    return output, jnp.array([0.0], dtype=jnp.float32)


def _reference_forward(x, anchors, num_classes, img_dim=416):
    """Pure-JAX reference mirroring the PyTorch forward (targets=None)."""
    x = x.astype(jnp.float32)
    n, c, g, _ = x.shape
    a = len(anchors)
    c5 = num_classes + 5
    stride = float(img_dim) / float(g)
    pred = x.reshape(n, a, c5, g, g).transpose(0, 1, 3, 4, 2)  # (N,A,G,G,C5)
    sx = jax.nn.sigmoid(pred[..., 0])
    sy = jax.nn.sigmoid(pred[..., 1])
    w = pred[..., 2]
    h = pred[..., 3]
    conf = jax.nn.sigmoid(pred[..., 4])
    cls = jax.nn.sigmoid(pred[..., 5:])
    grid_x = jnp.tile(jnp.arange(g, dtype=jnp.float32), (g, 1)).reshape(1, 1, g, g)
    grid_y = grid_x.transpose(0, 1, 3, 2)
    scaled = jnp.asarray(anchors, dtype=jnp.float32) / stride
    aw = scaled[:, 0].reshape(1, a, 1, 1)
    ah = scaled[:, 1].reshape(1, a, 1, 1)
    boxes = jnp.stack(
        [sx + grid_x, sy + grid_y, jnp.exp(w) * aw, jnp.exp(h) * ah], axis=-1
    )
    out = jnp.concatenate(
        [
            boxes.reshape(n, -1, 4) * stride,
            conf.reshape(n, -1, 1),
            cls.reshape(n, -1, num_classes),
        ],
        axis=-1,
    )
    return out


if __name__ == "__main__":
    # Deterministic config (no learnable weights in this module; anchors fixed)
    anchors = [(10.0, 13.0), (16.0, 30.0), (33.0, 23.0)]  # num_anchors = 3
    num_classes = 3                                        # C5 = 8
    img_dim = 416
    N, G = 2, 16
    C = len(anchors) * (num_classes + 5)                   # 24

    key = jax.random.PRNGKey(0)
    x = jax.random.normal(key, (N, C, G, G), dtype=jnp.float32)

    out, loss = yolo_layer_forward(x, anchors, num_classes, img_dim=img_dim)
    out = jax.block_until_ready(out)
    loss = jax.block_until_ready(loss)

    ref = _reference_forward(x, anchors, num_classes, img_dim=img_dim)
    assert out.shape == (N, len(anchors) * G * G, num_classes + 5)
    assert jnp.allclose(out, ref, atol=1e-4, rtol=1e-4)

    print("KERNEL_OK")
</pallas_src>

<mosaic_0001>
module attributes {stable_mosaic.version = 11 : i64} {
  func.func @_yolo_decode_kernel(%arg0: i32, %arg1: memref<3x8x256xf32, #tpu.memory_space<vmem>>, %arg2: memref<3x8x1xf32, #tpu.memory_space<vmem>>, %arg3: memref<1x8x256xf32, #tpu.memory_space<vmem>>, %arg4: memref<3x8x256xf32, #tpu.memory_space<vmem>>) attributes {dimension_semantics = [#tpu.dimension_semantics<parallel>], iteration_bounds = array<i64: 2>, scalar_prefetch = 0 : i64, scratch_operands = 0 : i64, tpu.core_type = #tpu.core_type<tc>, window_params = [{transform_indices = @transform_0, window_bounds = array<i64: 3, 8, 256>}, {transform_indices = @transform_1, window_bounds = array<i64: 3, 8, 1>}, {pipeline_mode = #tpu.pipeline_mode<synchronous>, transform_indices = @transform_2, window_bounds = array<i64: 1, 8, 256>}, {transform_indices = @transform_3, window_bounds = array<i64: 3, 8, 256>}]} {
    %c0 = arith.constant 0 : index
    %c0_0 = arith.constant 0 : index
    %c0_1 = arith.constant 0 : index
    %0 = vector.load %arg1[%c0, %c0_0, %c0_1] : memref<3x8x256xf32, #tpu.memory_space<vmem>>, vector<3x8x256xf32>
    %1 = arith.negf %0 : vector<3x8x256xf32>
    %2 = math.exp %1 : vector<3x8x256xf32>
    %cst = arith.constant 1.000000e+00 : f32
    %3 = vector.broadcast %cst : f32 to vector<3x8x256xf32>
    %4 = arith.addf %3, %2 : vector<3x8x256xf32>
    %5 = arith.divf %3, %4 : vector<3x8x256xf32>
    %6 = math.exp %0 : vector<3x8x256xf32>
    %7 = tpu.iota {dimensions = array<i32: 1>} : vector<1x8x1xi32>
    %c2_i32 = arith.constant 2 : i32
    %8 = vector.broadcast %c2_i32 : i32 to vector<1x8x1xi32>
    %9 = arith.cmpi sge, %7, %8 : vector<1x8x1xi32>
    %c3_i32 = arith.constant 3 : i32
    %10 = vector.broadcast %c3_i32 : i32 to vector<1x8x1xi32>
    %11 = arith.cmpi sle, %7, %10 : vector<1x8x1xi32>
    %12 = arith.andi %9, %11 : vector<1x8x1xi1>
    %13 = vector.shape_cast %12 : vector<1x8x1xi1> to vector<1x8x1xi1>
    %14 = vector.broadcast %13 : vector<1x8x1xi1> to vector<3x8x256xi1>
    %15 = arith.select %14, %6, %5 : vector<3x8x256xi1>, vector<3x8x256xf32>
    %c0_2 = arith.constant 0 : index
    %c0_3 = arith.constant 0 : index
    %c0_4 = arith.constant 0 : index
    %16 = vector.load %arg2[%c0_2, %c0_3, %c0_4] : memref<3x8x1xf32, #tpu.memory_space<vmem>>, vector<3x8x1xf32>
    %17 = vector.broadcast %16 : vector<3x8x1xf32> to vector<3x8x256xf32>
    %18 = arith.mulf %15, %17 : vector<3x8x256xf32>
    %c0_5 = arith.constant 0 : index
    %c0_6 = arith.constant 0 : index
    %c0_7 = arith.constant 0 : index
    %19 = vector.load %arg3[%c0_5, %c0_6, %c0_7] : memref<1x8x256xf32, #tpu.memory_space<vmem>>, vector<1x8x256xf32>
    %20 = vector.broadcast %19 : vector<1x8x256xf32> to vector<3x8x256xf32>
    %21 = arith.addf %18, %20 : vector<3x8x256xf32>
    %c0_8 = arith.constant 0 : index
    %c0_9 = arith.constant 0 : index
    %c0_10 = arith.constant 0 : index
    %22 = vector.load %arg4[%c0_8, %c0_9, %c0_10] : memref<3x8x256xf32, #tpu.memory_space<vmem>>, vector<3x8x256xf32>
    tpu.vector_store %arg4[%c0_8, %c0_9, %c0_10], %21 {strides = array<i32>} : memref<3x8x256xf32, #tpu.memory_space<vmem>>, vector<3x8x256xf32>,
    return
  }
  func.func @transform_0(%arg0: i32) -> (i32, i32, i32) {
    %c0_i32 = arith.constant 0 : i32
    %c0_i32_0 = arith.constant 0 : i32
    %c0_i32_1 = arith.constant 0 : i32
    return %arg0, %c0_i32, %c0_i32_0 : i32, i32, i32
  }
  func.func @transform_1(%arg0: i32) -> (i32, i32, i32) {
    %c0_i32 = arith.constant 0 : i32
    %c0_i32_0 = arith.constant 0 : i32
    %c0_i32_1 = arith.constant 0 : i32
    return %arg0, %c0_i32, %c0_i32_0 : i32, i32, i32
  }
  func.func @transform_2(%arg0: i32) -> (i32, i32, i32) {
    %c0_i32 = arith.constant 0 : i32
    %c0_i32_0 = arith.constant 0 : i32
    %c0_i32_1 = arith.constant 0 : i32
    %c0_i32_2 = arith.constant 0 : i32
    return %c0_i32, %c0_i32_0, %c0_i32_1 : i32, i32, i32
  }
  func.func @transform_3(%arg0: i32) -> (i32, i32, i32) {
    %c0_i32 = arith.constant 0 : i32
    %c0_i32_0 = arith.constant 0 : i32
    %c0_i32_1 = arith.constant 0 : i32
    return %arg0, %c0_i32, %c0_i32_0 : i32, i32, i32
  }
}

</mosaic_0001>

<bundles_post_ra>
// kernel: tpu_custom_call.1
= control target key start
LH: loop header
LB: loop body
LE: loop exit
PB: predicated region body
PF: predicated region fallthrough
CT: control target
= control target key end

     0   :  { %8 = vsyncpa [#allocation3], 0  ;;  %s832_s0 = inlined_call_operand.hbm [shape: f32[6,8,256], index: 0, kind: input, shape index: {}]   ;;  %s833_s1 = inlined_call_operand.vmem [shape: f32[6,8,1], index: 1, kind: input, shape index: {}]   ;;  %s834_s2 = inlined_call_operand.vmem [shape: f32[1,8,256], index: 2, kind: input, shape index: {}]   ;;  %s835_s3 = inlined_call_operand.hbm [shape: f32[6,8,256], index: 3, kind: output, shape index: {}]  }
   0x1   :  { %10 = vsyncpa [#allocation3 + $0x1], 0 }
   0x2   :  { %11 = vsyncpa [#allocation4], 0 }
   0x3   :  { %13 = vsyncpa [#allocation4 + $0x1], 0  ;;  %s654_s12 = smov 0   ;;  %s656_s13 = smov 0  }
   0x4   :  { %s658_s14 = smov 0   ;;  %s660_s15 = smov 0  }
   0x5 LB: > { %s675_s16 = sadd.s32 4294967295, %s625_s15   ;;  %s419_s17 = sadd.s32 4294967294, %s625_s15   ;;  %s625_s15 = sphi %s660_s15, %s851_s15   ;;  %s621_s14 = sphi %s658_s14, %s850_s14   ;;  %s617_s13 = sphi %s656_s13, %s849_s13   ;;  %s613_s12 = sphi %s654_s12, %s848_s12  }
   0x6   : > { %s679_s18 = sadd.s32 1, %s625_s15   ;;  %s26_s19 = sadd.s32 1, %s621_s14 }
   0x7   : > { %s23_s20 = ssub.s32 %s625_s15, %s679_s18  ;;  %p33_p0 = scmp.ne.s32.totalorder %s621_s14, %s617_s13 }
   0x8   : > { %p24_p1 = scmp.eq.s32.totalorder %s23_s20, 0  ;;  %p34_p2 = scmp.eq.s32.totalorder %s625_s15, 0 }
   0x9   : > { %p39_p3 = scmp.ne.s32.totalorder %s617_s13, %s613_s12  ;;  %p40_p4 = scmp.eq.s32.totalorder %s675_s16, 0 }
   0xa   : > { %s691_s21 = scalar_select %p24_p1, %s621_s14, %s26_s19  }
   0xb   : > { %p35_p5 = por %p34_p2, %p33_p0  ;;  %p693_p6 = por %p40_p4, %p39_p3 }
   0xc   : > { %p110_p7 = scmp.eq.s32.totalorder %s675_s16, 1  ;;  %p116_p8 = scmp.eq.s32.totalorder %s419_s17, 1 }
   0xd   : > { %s838_s22 = scalar_select %p693_p6, 1, 0 }
   0xe   : > { %p456_p10 = scmp.lt.s32.totalorder %s625_s15, 2  ;;  %p700_p11 = por %p110_p7, %p33_p0 }
   0xf   : > { %p704_p12 = por %p116_p8, %p39_p3  ;;  %s139_s25 = sand.u32 1, %s621_s14  }
  0x10   : > { %s839_s23 = scalar_select %p700_p11, 1, 0 }
  0x11   : > { %s840_s24 = scalar_select %p704_p12, 1, 0 }
  0x12   : > { %s440_s26 = smul.u32 768, %s625_s15  ;;  %p715_p13 = pnand %p456_p10, %p35_p5 }
  0x13   : > { %s442_s27 = smul.u32 48, %s139_s25  ;;  %s721_s7 = scalar_lea.sflag [#allocation3], %s139_s25 }
  0x14   : > { %s713_s30 = scalar_lea.hbm %s832_s0, %s440_s26  ;;  %p535_p1 = pneg %p715_p13 }
  0x15   : > { %s143_s5 = scalar_lea.vmem [#allocation2], %s442_s27  ;;  %s533_s8 = scalar_lea.hbm %s713_s30, 768 }
  0x16   : > { %s151_s6 = sshll.u32 %s143_s5, 4  ;;  %p534_p0 = scmp.ne.s32.totalorder %s713_s30, %s533_s8  ;;  %s719_s6 = int_to_ptr.vmem [resolvable:$true] %s151_s6 }
  0x17   : > { %s538_s11 = scalar_lea.hbm %s832_s0, 1536  ;;  %p539_p4 = scmp.lt.s32.totalorder %s713_s30, %s832_s0 }
  0x18   : > { %p536_p2 = pnand %p535_p1, %p534_p0  ;;  %p540_p5 = scmp.lt.s32.totalorder %s538_s11, %s533_s8 }
  0x1a   : > { %p537_p3 = pneg %p536_p2  ;;  %p541_p7 = por %p540_p5, %p539_p4 }
  0x1c   : > { %p542_p8 = pnand %p541_p7, %p537_p3 }
  0x1e   : > { %545 = shalt.err (!%p542_p8)
}
  0x1f   : > { %s546_s20 = scalar_lea.vmem %s719_s6, 768  ;;  %s627_s25 = smov [#allocation2]  }
  0x20   : > { %p547_p10 = scmp.ne.s32.totalorder %s719_s6, %s546_s20  ;;  %s551_s26 = sshll.u32 %s627_s25, 4  ;;  %s552_s26 = int_to_ptr.vmem [resolvable:$false] %s551_s26 }
  0x21   : > { %s553_s27 = scalar_lea.vmem %s552_s26, 1536  ;;  %p554_p2 = scmp.lt.s32.totalorder %s719_s6, %s552_s26 }
  0x22   : > { %p549_p9 = pnand %p547_p10, %p535_p1  ;;  %p555_p12 = scmp.lt.s32.totalorder %s553_s27, %s546_s20 }
  0x24   : > { %p550_p0 = pneg %p549_p9  ;;  %p556_p11 = por %p555_p12, %p554_p2 }
  0x26   : > { %p557_p6 = pnand %p556_p11, %p550_p0 }
  0x28   : > { %560 = shalt.err (!%p557_p6)
}
  0x29   : > { %s628_s28 = smov 256   ;;  %s629_s29 = smov 16  }
  0x2a   : > { %451 = dma.hbm_to_vmem [thread:$0]  (!%p715_p13), %s713_s30, 768, %s719_s6, %s721_s7, %s628_s28, %s628_s28, %s629_s29  }
  0x2b   : > { %p424_p9 = scmp.ge.s32.totalorder %s625_s15, 1  ;;  %p168_p1 = scmp.lt.s32.totalorder %s625_s15, 3 }
  0x2d   : > { %p169_p3 = pnand %p424_p9, %p168_p1 }
  0x2e   : > { %s745_s5 = sand.u32 (!%p169_p3), 1, %s617_s13   ;;  %p842_p6 = scmp.ne.s32.totalorder (!%p169_p3), %s838_s22, 0 }
  0x2f   : > { %172 = sbr.rel (%p169_p3) target bundleno = 207 (0xcf), region = 32  ;;  %s175_s9 = scalar_lea.sflag (!%p169_p3), [#allocation3], %s745_s5 }
  0x30   : > { %s443_s8 = smul.u32 (!%p169_p3), 48, %s745_s5 }
  0x32   : > { %s178_s10 = scalar_lea.vmem (!%p169_p3), [#allocation2], %s443_s8 }
  0x34   : > { %604 = dma.done.wait (%p842_p6), %s175_s9, 768  }
  0x35   : > { %606 = vsyncadd (%p842_p6), %s175_s9, 4294966528  ;;  %s207_s30 = smul.u32 3, %s675_s16  ;;  %v630_v0 = vmov 0   ;;  %v214_v4 = vld [vmem:[%s178_s10] sm:$0xff]  ;;  %v215_v5 = vld [vmem:[%s178_s10 + $0x8] sm:$0xff]  ;;  %v268_v34 = vlaneseq  ;;  %s205_s25 = scalar_lea.vmem [#allocation5], %s443_s8 }
  0x36   : > { %495 = vset.pattern.permute.xlu0 %v630_v0  ;;  %496 = vset.pattern.permute.xlu1 %v630_v0  ;;  %v218_v6 = vld [vmem:[%s178_s10 + $0x20] sm:$0xff]  ;;  %v426_v7 = vmul.f32 -1.442695, %v214_v4  ;;  %v219_v8 = vld [vmem:[%s178_s10 + $0x28] sm:$0xff]  ;;  %v427_v9 = vmul.f32 -1.442695, %v215_v5 }
  0x37   : > { %p208_p11 = scmp.lt.s32.totalorder %s207_s30, 5  ;;  %v430_v10 = vmul.f32 -1.442695, %v218_v6  ;;  %v431_v11 = vmul.f32 -1.442695, %v219_v8  ;;  %v216_v12 = vld [vmem:[%s178_s10 + $0x10] sm:$0xff] }
  0x38   : > { %497 = vpow2.f32 %v426_v7  ;;  %v217_v13 = vld [vmem:[%s178_s10 + $0x18] sm:$0xff]  ;;  %v428_v14 = vmul.f32 -1.442695, %v216_v12  ;;  %v256_v16 = vmul.f32 1.442695, %v214_v4  ;;  %v269_v36 = vshrl.u32 %v268_v34, 7 }
  0x39   : > { %s853_s30 = smov (!%p208_p11, %s207_s30), 5  ;;  %499 = vpow2.f32 %v427_v9  ;;  %v429_v15 = vmul.f32 -1.442695, %v217_v13  ;;  %v258_v18 = vmul.f32 1.442695, %v215_v5  ;;  %v305_v53 = vld [vmem:[%s834_s2] sm:$0xff] }
  0x3a   : > { %s425_s4 = sshll.u32 %s853_s30, 3  ;;  %501 = vpow2.f32 %v430_v10  ;;  %v264_v20 = vmul.f32 1.442695, %v218_v6  ;;  %v266_v22 = vmul.f32 1.442695, %v219_v8  ;;  %vm270_vm0 = vcmp.ge.s32.totalorder %v269_v36, 2 }
  0x3b   : > { %s211_s11 = scalar_lea.vmem %s833_s1, %s425_s4  ;;  %503 = vpow2.f32 %v431_v11  ;;  %v260_v30 = vmul.f32 1.442695, %v216_v12  ;;  %v262_v31 = vmul.f32 1.442695, %v217_v13  ;;  %vm271_vm1 = vcmp.le.s32.totalorder %v269_v36, 3  ;;  %v306_v54 = vld [vmem:[%s834_s2 + $0x8] sm:$0xff] }
  0x3c   : > { %v281_v1 = vld [vmem:[%s211_s11] sm:$0xff]  ;;  %v283_v2 = vld [vmem:[%s211_s11 + $0x10] sm:$0xff]  ;;  %v282_v3 = vld [vmem:[%s211_s11 + $0x8] sm:$0xff]  ;;  %505 = vpow2.f32 %v428_v14  ;;  %s334_s26 = sshll.u32 %s205_s25, 4  ;;  %s441_s27 = smul.u32 768, %s675_s16  ;;  %s784_s26 = int_to_ptr.vmem [resolvable:$true] %s334_s26 }
  0x3d   : > { %286 = vperm.xlu0 %495, %v281_v1   ;;  %296 = vperm.xlu1 %496, %v283_v2   ;;  %507 = vpow2.f32 %v429_v15  ;;  %vm759_vm2 = vmand %vm270_vm0, %vm271_vm1  ;;  %s320_s8 = scalar_lea.sflag [#allocation4], %s745_s5  ;;  %s561_s9 = scalar_lea.vmem %s784_s26, 768 }
  0x3e   : > { %509 = vpow2.f32 %v256_v16  ;;  %s789_s29 = scalar_lea.hbm %s835_s3, %s441_s27  ;;  %p562_p12 = scmp.ne.s32.totalorder %s784_s26, %s561_s9 }
  0x3f   : > { %511 = vpow2.f32 %v258_v18  ;;  %p845_p13 = scmp.ne.s32.totalorder %s839_s23, 0  ;;  %s631_s10 = smov [#allocation5]  }
  0x40   : > { %513 = vpow2.f32 %v264_v20  ;;  %s565_s30 = sshll.u32 %s631_s10, 4  ;;  %s566_s30 = int_to_ptr.vmem [resolvable:$false] %s565_s30 }
  0x41   : > { %291 = vperm.xlu0 %495, %v282_v3   ;;  %515 = vpow2.f32 %v266_v22  ;;  %p563_p4 = pnand %p562_p12, %p845_p13  ;;  %s567_s4 = scalar_lea.vmem %s566_s30, 1536 }
  0x42   : > { %p568_p7 = scmp.lt.s32.totalorder %s784_s26, %s566_s30  ;;  %p569_p8 = scmp.lt.s32.totalorder %s567_s4, %s561_s9 }
  0x43   : > { %p564_p5 = pneg %p563_p4 }
  0x44   : > { %p570_p10 = por %p569_p8, %p568_p7 }
  0x45   : > { %v498_v17 = vpop.eup %497 }
  0x46   : > { %v500_v19 = vpop.eup %499  ;;  %v238_v24 = vadd.f32 1.0, %v498_v17  ;;  %p571_p0 = pnand %p570_p10, %p564_p5 }
  0x47   : > { %v502_v21 = vpop.eup %501  ;;  %v239_v25 = vadd.f32 1.0, %v500_v19 }
  0x48   : > { %v504_v23 = vpop.eup %503  ;;  %v242_v26 = vadd.f32 1.0, %v502_v21  ;;  %517 = vrcp.f32 %v238_v24 }
  0x49   : > { %v506_v27 = vpop.eup %505  ;;  %v243_v28 = vadd.f32 1.0, %v504_v23  ;;  %519 = vrcp.f32 %v239_v25 }
  0x4a   : > { %v508_v29 = vpop.eup %507  ;;  %521 = vrcp.f32 %v242_v26  ;;  %v240_v32 = vadd.f32 1.0, %v506_v27 }
  0x4b   : > { %523 = vrcp.f32 %v243_v28  ;;  %v241_v33 = vadd.f32 1.0, %v508_v29  ;;  %v510_v35 = vpop.eup %509 }
  0x4c   : > { %525 = vpow2.f32 %v260_v30  ;;  %v512_v37 = vpop.eup %511 }
  0x4d   : > { %527 = vpow2.f32 %v262_v31  ;;  %v514_v38 = vpop.eup %513 }
  0x4e   : > { %529 = vrcp.f32 %v240_v32  ;;  %v516_v39 = vpop.eup %515 }
  0x4f   : > { %531 = vrcp.f32 %v241_v33 }
  0x55   : > { %v518_v40 = vpop.eup %517 }
  0x56   : > { %v520_v41 = vpop.eup %519  ;;  %v275_v48 = vsel %vm759_vm2, %v510_v35, %v518_v40 }
  0x57   : > { %v522_v42 = vpop.eup %521  ;;  %v276_v49 = vsel %vm759_vm2, %v512_v37, %v520_v41 }
  0x58   : > { %v524_v43 = vpop.eup %523  ;;  %v279_v50 = vsel %vm759_vm2, %v514_v38, %v522_v42 }
  0x59   : > { %v526_v45 = vpop.eup %525  ;;  %v280_v51 = vsel %vm759_vm2, %v516_v39, %v524_v43 }
  0x5a   : > { %v528_v46 = vpop.eup %527 }
  0x5b   : > { %v530_v47 = vpop.eup %529 }
  0x5c   : > { %v532_v52 = vpop.eup %531  ;;  %v277_v61 = vsel %vm759_vm2, %v526_v45, %v530_v47 }
  0x5d   : > { %v278_v62 = vsel %vm759_vm2, %v528_v46, %v532_v52 }
  0xb8   : > { %v287_v55 = vpop.permute.xlu0 %286  ;;  %v297_v56 = vpop.permute.xlu1 %296 }
  0xb9   : > { %v299_v57 = vmul.f32 %v287_v55, %v275_v48  ;;  %v300_v58 = vmul.f32 %v287_v55, %v276_v49  ;;  %v303_v59 = vmul.f32 %v297_v56, %v279_v50  ;;  %v304_v60 = vmul.f32 %v297_v56, %v280_v51 }
  0xbb   : > { %v307_v63 = vadd.f32 %v305_v53, %v299_v57  ;;  %v308_v0 = vadd.f32 %v306_v54, %v300_v58  ;;  %v311_v1 = vadd.f32 %v305_v53, %v303_v59  ;;  %v312_v2 = vadd.f32 %v306_v54, %v304_v60 }
  0xbc   : > { %v292_v3 = vpop.permute.xlu0 %291 }
  0xbd   : > { %313 = vst [vmem:[%s205_s25] sm:$0xff] %v307_v63  ;;  %314 = vst [vmem:[%s205_s25 + $0x8] sm:$0xff] %v308_v0  ;;  %v301_v4 = vmul.f32 %v292_v3, %v277_v61  ;;  %v302_v5 = vmul.f32 %v292_v3, %v278_v62 }
  0xbe   : > { %317 = vst [vmem:[%s205_s25 + $0x20] sm:$0xff] %v311_v1  ;;  %318 = vst [vmem:[%s205_s25 + $0x28] sm:$0xff] %v312_v2 }
  0xbf   : > { %v309_v6 = vadd.f32 %v305_v53, %v301_v4  ;;  %v310_v7 = vadd.f32 %v306_v54, %v302_v5 }
  0xc1   : > { %315 = vst [vmem:[%s205_s25 + $0x10] sm:$0xff] %v309_v6  ;;  %316 = vst [vmem:[%s205_s25 + $0x18] sm:$0xff] %v310_v7 }
  0xc2   : > { %574 = shalt.err (!%p571_p0)
}
  0xc3   : > { %s575_s6 = scalar_lea.hbm %s789_s29, 768  ;;  %s579_s22 = scalar_lea.hbm %s835_s3, 1536 }
  0xc4   : > { %p576_p2 = scmp.ne.s32.totalorder %s789_s29, %s575_s6  ;;  %p580_p3 = scmp.lt.s32.totalorder %s789_s29, %s835_s3 }
  0xc5   : > { %p581_p6 = scmp.lt.s32.totalorder %s579_s22, %s575_s6 }
  0xc6   : > { %p577_p9 = pnand %p576_p2, %p845_p13 }
  0xc7   : > { %p582_p11 = por %p581_p6, %p580_p3 }
  0xc8   : > { %p578_p1 = pneg %p577_p9 }
  0xca   : > { %p583_p12 = pnand %p582_p11, %p578_p1 }
  0xcc   : > { %586 = shalt.err (!%p583_p12)
}
  0xcd   : > { %s632_s20 = smov 256   ;;  %s633_s25 = smov 16  }
  0xce   : > { %446 = dma.vmem_to_hbm [thread:$0]  (%p845_p13), %s784_s26, 768, %s789_s29, %s320_s8, %s632_s20, %s632_s20, %s633_s25  }
  0xcf PF: > { %s349_s27 = sand.u32 1, %s613_s12   ;;  %p846_p4 = scmp.ne.s32.totalorder %s840_s24, 0 }
  0xd0   : > { %p847_p5 = scmp.ge.s32.totalorder %s625_s15, 2  ;;  %s350_s28 = scalar_lea.sflag [#allocation4], %s349_s27 }
  0xd2   : > { %p453_p7 = pnand %p847_p5, %p846_p4 }
  0xd4   : > { %p454_p8 = pneg %p453_p7 }
  0xd6   : > { %608 = dma.done.wait (%p454_p8), %s350_s28, 768  }
  0xd7   : > { %610 = vsyncadd (%p454_p8), %s350_s28, 4294966528  ;;  %p16_p10 = scmp.ge.s32.totalorder %s679_s18, 4   ;;  %s848_s12 = smov %s617_s13 }
  0xd8   : > { %s849_s13 = smov %s621_s14  ;;  %s850_s14 = smov %s691_s21 }
  0xd9   : > { %s851_s15 = smov %s679_s18  ;;  %18 = sbr.rel (!%p16_p10) target bundleno = 5 (0x5), region = 80 }
  0xde   :  { %355 = vsyncpa [#allocation3], 1 }
  0xdf   :  { %357 = vsyncpa [#allocation3 + $0x1], 1 }
  0xe0   :  { %358 = vsyncpa [#allocation4], 1 }
  0xe1   :  { %360 = vsyncpa [#allocation4 + $0x1], 1 }

</bundles_post_ra>
